<compile_context>
chip_gen: v7x
topology: tpu7x:2x2x1
jax: 0.10.0
libtpu: 0.0.40
codegen_flags: <defaults>
</compile_context>

<pallas_src>
import functools

import jax
import jax.numpy as jnp
from jax import lax
from jax.experimental import pallas as pl
from jax.experimental.pallas import tpu as pltpu


# ---------------------------------------------------------------------------
# Fused kernel (one grid step == one sample)
#   p_ref  : (4*Hp*Wp, Kpad) im2col patches, rows ordered (h%2, w%2, iy, ix)
#   w1_ref : (Kpad, 64) conv weight as GEMM matrix (zero-padded K rows)
#   s1/t1  : BN1 scale / shift (conv bias folded into t1)
#   s2/t2  : BN2 scale / shift
#   wfc/bfc: Linear(64 -> 10)
#   o_ref  : (1, 1, 10) logits block for this sample
# ---------------------------------------------------------------------------
def densenet_fused_kernel(p_ref, w1_ref, s1_ref, t1_ref, s2_ref, t2_ref,
                          wfc_ref, bfc_ref, o_ref, *, hp, wp):
    C = w1_ref.shape[1]

    # stem conv as GEMM (MXU, f32 accumulate) + BN1 (bias folded) + ReLU
    acc = jnp.dot(p_ref[...], w1_ref[...], preferred_element_type=jnp.float32)
    conv = jnp.maximum(acc * s1_ref[...] + t1_ref[...], 0.0)      # (4*hp*wp, C)

    # Parity planes: plane (py, px) holds conv[2*iy + py, 2*ix + px, :].
    m = hp * wp
    p00 = conv[0 * m:1 * m, :].reshape(hp, wp, C)
    p01 = conv[1 * m:2 * m, :].reshape(hp, wp, C)
    p10 = conv[2 * m:3 * m, :].reshape(hp, wp, C)
    p11 = conv[3 * m:4 * m, :].reshape(hp, wp, C)

    def shift_h(x):   # x[i-1, j, :] with a zero row at i == 0 (safe: x >= 0)
        return jnp.concatenate([jnp.zeros_like(x[:1]), x[:-1]], axis=0)

    def shift_w(x):   # x[i, j-1, :] with a zero column at j == 0
        return jnp.concatenate([jnp.zeros_like(x[:, :1]), x[:, :-1]], axis=1)

    # MaxPool 3x3 / stride 2 / pad 1: the 9 window taps of out[i, j] are
    #   conv[2i+dy, 2j+dx], dy,dx in {-1,0,1}  ==  parity planes + unit shifts.
    p10_h = shift_h(p10)
    p11_h = shift_h(p11)
    pooled = jnp.maximum(jnp.maximum(p00, p01), jnp.maximum(p10, p11))
    pooled = jnp.maximum(pooled, jnp.maximum(shift_w(p01), shift_w(p11)))
    pooled = jnp.maximum(pooled, jnp.maximum(p10_h, p11_h))
    pooled = jnp.maximum(pooled, shift_w(p11_h))                  # (hp, wp, C)

    # BN2 + ReLU + global average pool + Linear (vectorized head, single dot).
    y = jnp.maximum(pooled * s2_ref[...] + t2_ref[...], 0.0)
    gap = jnp.mean(y.reshape(hp * wp, C), axis=0, keepdims=True)  # (1, C)
    o_ref[0] = jnp.dot(gap, wfc_ref[...],
                       preferred_element_type=jnp.float32) + bfc_ref[...]


# ---------------------------------------------------------------------------
# Wrapper: layout transpose + im2col + parity row ordering (glue), one pallas_call
# ---------------------------------------------------------------------------
def densenet_forward(x_nchw, params):
    N, Cin, H, W = x_nchw.shape
    x = jnp.transpose(x_nchw, (0, 2, 3, 1)).astype(jnp.float32)   # NCHW -> NHWC

    # conv 7x7 / stride 2 / pad 3 geometry
    Ho = (H + 2 * 3 - 7) // 2 + 1
    Wo = (W + 2 * 3 - 7) // 2 + 1
    assert Ho % 2 == 0 and Wo % 2 == 0, "parity max-pool path assumes even conv output"
    Hp, Wp = Ho // 2, Wo // 2

    # ---- im2col (glue) ----
    xp = jnp.pad(x, ((0, 0), (3, 3), (3, 3), (0, 0)))
    taps = []
    for ky in range(7):
        for kx in range(7):
            taps.append(xp[:, ky:ky + 2 * Ho:2, kx:kx + 2 * Wo:2, :])
    pat = jnp.concatenate(taps, axis=-1)                          # (N, Ho, Wo, 147)

    K = 7 * 7 * Cin
    Kpad = params["w1_mat"].shape[0]
    pat = jnp.pad(pat, ((0, 0), (0, 0), (0, 0), (0, Kpad - K)))   # K -> aligned (256)

    # Reorder GEMM rows to (n, h%2, w%2, iy, ix) so each parity plane is a
    # contiguous, tile-aligned row block of the conv output inside the kernel.
    pat = pat.reshape(N, Hp, 2, Wp, 2, Kpad)                      # (n, iy, py, ix, px, K)
    pat = jnp.transpose(pat, (0, 2, 4, 1, 3, 5))                  # (n, py, px, iy, ix, K)
    patches = pat.reshape(N * 4 * Hp * Wp, Kpad)

    C = params["w1_mat"].shape[1]
    n_cls = params["wfc"].shape[1]
    rows = 4 * Hp * Wp                                            # rows per sample

    kernel = functools.partial(densenet_fused_kernel, hp=Hp, wp=Wp)
    out = pl.pallas_call(
        kernel,
        out_shape=jax.ShapeDtypeStruct((N, 1, n_cls), jnp.float32),
        grid=(N,),
        in_specs=[
            pl.BlockSpec((rows, Kpad), lambda n: (n, 0)),
            pl.BlockSpec((Kpad, C), lambda n: (0, 0)),
            pl.BlockSpec((1, C), lambda n: (0, 0)),
            pl.BlockSpec((1, C), lambda n: (0, 0)),
            pl.BlockSpec((1, C), lambda n: (0, 0)),
            pl.BlockSpec((1, C), lambda n: (0, 0)),
            pl.BlockSpec((C, n_cls), lambda n: (0, 0)),
            pl.BlockSpec((1, n_cls), lambda n: (0, 0)),
        ],
        out_specs=pl.BlockSpec((1, 1, n_cls), lambda n: (n, 0, 0)),
        compiler_params=pltpu.CompilerParams(dimension_semantics=("parallel",)),
    )(patches, params["w1_mat"], params["bn1_scale"], params["bn1_shift"],
      params["bn2_scale"], params["bn2_shift"], params["wfc"], params["bfc"])
    return out.reshape(N, n_cls)


# ---------------------------------------------------------------------------
# Pure-JAX reference (independent path) for correctness checking
# ---------------------------------------------------------------------------
def reference_forward(x_nchw, raw):
    x = x_nchw.astype(jnp.float32)
    conv = lax.conv_general_dilated(
        x, raw["w1"], window_strides=(2, 2), padding=((3, 3), (3, 3)),
        dimension_numbers=("NCHW", "OIHW", "NCHW"))
    conv = conv + raw["b1"][None, :, None, None]
    bn1 = conv * raw["s1"][None, :, None, None] + raw["t1"][None, :, None, None]
    r1 = jnp.maximum(bn1, 0.0)
    mp = lax.reduce_window(r1, -jnp.inf, lax.max,
                           (1, 1, 3, 3), (1, 1, 2, 2),
                           ((0, 0), (0, 0), (1, 1), (1, 1)))
    bn2 = mp * raw["s2"][None, :, None, None] + raw["t2"][None, :, None, None]
    r2 = jnp.maximum(bn2, 0.0)
    gap = jnp.mean(r2, axis=(2, 3))                      # (N, 64)
    return gap @ raw["wfc"] + raw["bfc"]                 # (N, 10)


def make_params(key):
    Cin, Cmid, ncls, eps = 3, 64, 10, 1e-5
    K, Kpad = 7 * 7 * Cin, 256
    ks = jax.random.split(key, 8)
    w1 = 0.05 * jax.random.normal(ks[0], (Cmid, Cin, 7, 7), jnp.float32)  # torch OIHW
    b1 = 0.05 * jax.random.normal(ks[1], (Cmid,), jnp.float32)
    g1 = 1.0 + 0.1 * jax.random.normal(ks[2], (Cmid,), jnp.float32)
    be1 = 0.1 * jax.random.normal(ks[3], (Cmid,), jnp.float32)
    g2 = 1.0 + 0.1 * jax.random.normal(ks[4], (Cmid,), jnp.float32)
    be2 = 0.1 * jax.random.normal(ks[5], (Cmid,), jnp.float32)
    wfc = 0.05 * jax.random.normal(ks[6], (Cmid, ncls), jnp.float32)      # = torch W.T
    bfc = 0.05 * jax.random.normal(ks[7], (ncls,), jnp.float32)
    # BatchNorm (inference mode): running_mean=0, running_var=1 (fresh-module stats)
    mean = jnp.zeros((Cmid,), jnp.float32)
    var = jnp.ones((Cmid,), jnp.float32)
    s1 = g1 / jnp.sqrt(var + eps)
    t1 = be1 - mean * s1
    s2 = g2 / jnp.sqrt(var + eps)
    t2 = be2 - mean * s2
    raw = dict(w1=w1, b1=b1, s1=s1, t1=t1, s2=s2, t2=t2, wfc=wfc, bfc=bfc)

    # Kernel-side params: conv weight as (kh, kw, Cin, Cout) GEMM matrix, K padded to 256;
    # conv bias folded into the BN1 shift.
    w1_mat = jnp.transpose(w1, (2, 3, 1, 0)).reshape(K, Cmid)
    w1_mat = jnp.pad(w1_mat, ((0, Kpad - K), (0, 0)))
    params = dict(
        w1_mat=w1_mat,
        bn1_scale=s1.reshape(1, Cmid),
        bn1_shift=(b1 * s1 + t1).reshape(1, Cmid),
        bn2_scale=s2.reshape(1, Cmid),
        bn2_shift=t2.reshape(1, Cmid),
        wfc=wfc,
        bfc=bfc.reshape(1, ncls),
    )
    return params, raw


if __name__ == "__main__":
    key = jax.random.PRNGKey(0)
    pkey, xkey = jax.random.split(key)
    params, raw = make_params(pkey)

    # N=2, C=3, H=W=32  ->  conv: (2,64,16,16) -> pool: (2,64,8,8) -> logits (2,10)
    x = jax.random.normal(xkey, (2, 3, 32, 32), jnp.float32)

    out = jax.block_until_ready(densenet_forward(x, params))
    ref = jax.block_until_ready(reference_forward(x, raw))

    assert out.shape == (2, 10)
    assert jnp.allclose(out, ref, rtol=1e-3, atol=1e-3), (out, ref)
    print("KERNEL_OK")
</pallas_src>

<mosaic_0001>
module attributes {stable_mosaic.version = 11 : i64} {
  func.func @densenet_fused_kernel(%arg0: i32, %arg1: memref<256x256xf32, #tpu.memory_space<vmem>>, %arg2: memref<256x64xf32, #tpu.memory_space<vmem>>, %arg3: memref<1x64xf32, #tpu.memory_space<vmem>>, %arg4: memref<1x64xf32, #tpu.memory_space<vmem>>, %arg5: memref<1x64xf32, #tpu.memory_space<vmem>>, %arg6: memref<1x64xf32, #tpu.memory_space<vmem>>, %arg7: memref<64x10xf32, #tpu.memory_space<vmem>>, %arg8: memref<1x10xf32, #tpu.memory_space<vmem>>, %arg9: memref<1x1x10xf32, #tpu.memory_space<vmem>>) attributes {dimension_semantics = [#tpu.dimension_semantics<parallel>], iteration_bounds = array<i64: 2>, scalar_prefetch = 0 : i64, scratch_operands = 0 : i64, tpu.core_type = #tpu.core_type<tc>, window_params = [{transform_indices = @transform_0, window_bounds = array<i64: 256, 256>}, {pipeline_mode = #tpu.pipeline_mode<synchronous>, transform_indices = @transform_1, window_bounds = array<i64: 256, 64>}, {pipeline_mode = #tpu.pipeline_mode<synchronous>, transform_indices = @transform_2, window_bounds = array<i64: 1, 64>}, {pipeline_mode = #tpu.pipeline_mode<synchronous>, transform_indices = @transform_3, window_bounds = array<i64: 1, 64>}, {pipeline_mode = #tpu.pipeline_mode<synchronous>, transform_indices = @transform_4, window_bounds = array<i64: 1, 64>}, {pipeline_mode = #tpu.pipeline_mode<synchronous>, transform_indices = @transform_5, window_bounds = array<i64: 1, 64>}, {pipeline_mode = #tpu.pipeline_mode<synchronous>, transform_indices = @transform_6, window_bounds = array<i64: 64, 10>}, {pipeline_mode = #tpu.pipeline_mode<synchronous>, transform_indices = @transform_7, window_bounds = array<i64: 1, 10>}, {transform_indices = @transform_8, window_bounds = array<i64: 1, 1, 10>}]} {
    %c0 = arith.constant 0 : index
    %c0_0 = arith.constant 0 : index
    %0 = vector.load %arg1[%c0, %c0_0] : memref<256x256xf32, #tpu.memory_space<vmem>>, vector<256x256xf32>
    %c0_1 = arith.constant 0 : index
    %c0_2 = arith.constant 0 : index
    %1 = vector.load %arg2[%c0_1, %c0_2] : memref<256x64xf32, #tpu.memory_space<vmem>>, vector<256x64xf32>
    %cst = arith.constant dense<0.000000e+00> : vector<256x64xf32>
    %2 = tpu.matmul %0, %1, %cst {dimension_numbers = #tpu.dot_dimension_numbers<[1], [0], [0], [1], [0, 0, 1, 1], [], []>} : vector<256x256xf32>, vector<256x64xf32>, vector<256x64xf32> -> vector<256x64xf32>
    %c0_3 = arith.constant 0 : index
    %c0_4 = arith.constant 0 : index
    %3 = vector.load %arg3[%c0_3, %c0_4] : memref<1x64xf32, #tpu.memory_space<vmem>>, vector<1x64xf32>
    %4 = vector.broadcast %3 : vector<1x64xf32> to vector<256x64xf32>
    %5 = arith.mulf %2, %4 : vector<256x64xf32>
    %c0_5 = arith.constant 0 : index
    %c0_6 = arith.constant 0 : index
    %6 = vector.load %arg4[%c0_5, %c0_6] : memref<1x64xf32, #tpu.memory_space<vmem>>, vector<1x64xf32>
    %7 = vector.broadcast %6 : vector<1x64xf32> to vector<256x64xf32>
    %8 = arith.addf %5, %7 : vector<256x64xf32>
    %cst_7 = arith.constant 0.000000e+00 : f32
    %9 = vector.broadcast %cst_7 : f32 to vector<256x64xf32>
    %10 = arith.maximumf %8, %9 : vector<256x64xf32>
    %11 = vector.extract_strided_slice %10 {offsets = [0, 0], sizes = [64, 64], strides = [1, 1]} : vector<256x64xf32> to vector<64x64xf32>
    %12 = vector.shape_cast %11 : vector<64x64xf32> to vector<8x8x64xf32>
    %13 = vector.extract_strided_slice %10 {offsets = [64, 0], sizes = [64, 64], strides = [1, 1]} : vector<256x64xf32> to vector<64x64xf32>
    %14 = vector.shape_cast %13 : vector<64x64xf32> to vector<8x8x64xf32>
    %15 = vector.extract_strided_slice %10 {offsets = [128, 0], sizes = [64, 64], strides = [1, 1]} : vector<256x64xf32> to vector<64x64xf32>
    %16 = vector.shape_cast %15 : vector<64x64xf32> to vector<8x8x64xf32>
    %17 = vector.extract_strided_slice %10 {offsets = [192, 0], sizes = [64, 64], strides = [1, 1]} : vector<256x64xf32> to vector<64x64xf32>
    %18 = vector.shape_cast %17 : vector<64x64xf32> to vector<8x8x64xf32>
    %cst_8 = arith.constant 0.000000e+00 : f32
    %19 = vector.broadcast %cst_8 : f32 to vector<1x8x64xf32>
    %20 = vector.extract_strided_slice %16 {offsets = [0, 0, 0], sizes = [7, 8, 64], strides = [1, 1, 1]} : vector<8x8x64xf32> to vector<7x8x64xf32>
    %21 = tpu.concatenate %19, %20 in 0 : vector<1x8x64xf32>, vector<7x8x64xf32> -> vector<8x8x64xf32>
    %cst_9 = arith.constant 0.000000e+00 : f32
    %22 = vector.broadcast %cst_9 : f32 to vector<1x8x64xf32>
    %23 = vector.extract_strided_slice %18 {offsets = [0, 0, 0], sizes = [7, 8, 64], strides = [1, 1, 1]} : vector<8x8x64xf32> to vector<7x8x64xf32>
    %24 = tpu.concatenate %22, %23 in 0 : vector<1x8x64xf32>, vector<7x8x64xf32> -> vector<8x8x64xf32>
    %25 = arith.maximumf %12, %14 : vector<8x8x64xf32>
    %26 = arith.maximumf %16, %18 : vector<8x8x64xf32>
    %27 = arith.maximumf %25, %26 : vector<8x8x64xf32>
    %cst_10 = arith.constant 0.000000e+00 : f32
    %28 = vector.broadcast %cst_10 : f32 to vector<8x1x64xf32>
    %29 = vector.extract_strided_slice %14 {offsets = [0, 0, 0], sizes = [8, 7, 64], strides = [1, 1, 1]} : vector<8x8x64xf32> to vector<8x7x64xf32>
    %30 = tpu.concatenate %28, %29 in 1 : vector<8x1x64xf32>, vector<8x7x64xf32> -> vector<8x8x64xf32>
    %cst_11 = arith.constant 0.000000e+00 : f32
    %31 = vector.broadcast %cst_11 : f32 to vector<8x1x64xf32>
    %32 = vector.extract_strided_slice %18 {offsets = [0, 0, 0], sizes = [8, 7, 64], strides = [1, 1, 1]} : vector<8x8x64xf32> to vector<8x7x64xf32>
    %33 = tpu.concatenate %31, %32 in 1 : vector<8x1x64xf32>, vector<8x7x64xf32> -> vector<8x8x64xf32>
    %34 = arith.maximumf %30, %33 : vector<8x8x64xf32>
    %35 = arith.maximumf %27, %34 : vector<8x8x64xf32>
    %36 = arith.maximumf %21, %24 : vector<8x8x64xf32>
    %37 = arith.maximumf %35, %36 : vector<8x8x64xf32>
    %cst_12 = arith.constant 0.000000e+00 : f32
    %38 = vector.broadcast %cst_12 : f32 to vector<8x1x64xf32>
    %39 = vector.extract_strided_slice %24 {offsets = [0, 0, 0], sizes = [8, 7, 64], strides = [1, 1, 1]} : vector<8x8x64xf32> to vector<8x7x64xf32>
    %40 = tpu.concatenate %38, %39 in 1 : vector<8x1x64xf32>, vector<8x7x64xf32> -> vector<8x8x64xf32>
    %41 = arith.maximumf %37, %40 : vector<8x8x64xf32>
    %c0_13 = arith.constant 0 : index
    %c0_14 = arith.constant 0 : index
    %42 = vector.load %arg5[%c0_13, %c0_14] : memref<1x64xf32, #tpu.memory_space<vmem>>, vector<1x64xf32>
    %43 = vector.shape_cast %42 : vector<1x64xf32> to vector<1x1x64xf32>
    %44 = vector.broadcast %43 : vector<1x1x64xf32> to vector<8x8x64xf32>
    %45 = arith.mulf %41, %44 : vector<8x8x64xf32>
    %c0_15 = arith.constant 0 : index
    %c0_16 = arith.constant 0 : index
    %46 = vector.load %arg6[%c0_15, %c0_16] : memref<1x64xf32, #tpu.memory_space<vmem>>, vector<1x64xf32>
    %47 = vector.shape_cast %46 : vector<1x64xf32> to vector<1x1x64xf32>
    %48 = vector.broadcast %47 : vector<1x1x64xf32> to vector<8x8x64xf32>
    %49 = arith.addf %45, %48 : vector<8x8x64xf32>
    %cst_17 = arith.constant 0.000000e+00 : f32
    %50 = vector.broadcast %cst_17 : f32 to vector<8x8x64xf32>
    %51 = arith.maximumf %49, %50 : vector<8x8x64xf32>
    %52 = vector.shape_cast %51 : vector<8x8x64xf32> to vector<64x64xf32>
    %cst_18 = arith.constant dense<0.000000e+00> : vector<64xf32>
    %53 = vector.multi_reduction <add>, %52, %cst_18 [0] : vector<64x64xf32> to vector<64xf32>
    %54 = vector.shape_cast %53 : vector<64xf32> to vector<1x64xf32>
    %cst_19 = arith.constant 6.400000e+01 : f32
    %55 = vector.broadcast %cst_19 : f32 to vector<1x64xf32>
    %56 = arith.divf %54, %55 : vector<1x64xf32>
    %c0_20 = arith.constant 0 : index
    %c0_21 = arith.constant 0 : index
    %57 = vector.load %arg7[%c0_20, %c0_21] : memref<64x10xf32, #tpu.memory_space<vmem>>, vector<64x10xf32>
    %cst_22 = arith.constant dense<0.000000e+00> : vector<1x10xf32>
    %58 = tpu.matmul %56, %57, %cst_22 {dimension_numbers = #tpu.dot_dimension_numbers<[1], [0], [0], [1], [0, 0, 1, 1], [], []>} : vector<1x64xf32>, vector<64x10xf32>, vector<1x10xf32> -> vector<1x10xf32>
    %c0_23 = arith.constant 0 : index
    %c0_24 = arith.constant 0 : index
    %59 = vector.load %arg8[%c0_23, %c0_24] : memref<1x10xf32, #tpu.memory_space<vmem>>, vector<1x10xf32>
    %60 = arith.addf %58, %59 : vector<1x10xf32>
    %c0_25 = arith.constant 0 : index
    %c0_26 = arith.constant 0 : index
    %c0_27 = arith.constant 0 : index
    %61 = vector.load %arg9[%c0_25, %c0_26, %c0_27] : memref<1x1x10xf32, #tpu.memory_space<vmem>>, vector<1x1x10xf32>
    %62 = vector.shape_cast %61 : vector<1x1x10xf32> to vector<1x10xf32>
    %63 = vector.shape_cast %60 : vector<1x10xf32> to vector<1x1x10xf32>
    tpu.vector_store %arg9[%c0_25, %c0_26, %c0_27], %63 {strides = array<i32>} : memref<1x1x10xf32, #tpu.memory_space<vmem>>, vector<1x1x10xf32>,
    return
  }
  func.func @transform_0(%arg0: i32) -> (i32, i32) {
    %c0_i32 = arith.constant 0 : i32
    %c0_i32_0 = arith.constant 0 : i32
    return %arg0, %c0_i32 : i32, i32
  }
  func.func @transform_1(%arg0: i32) -> (i32, i32) {
    %c0_i32 = arith.constant 0 : i32
    %c0_i32_0 = arith.constant 0 : i32
    %c0_i32_1 = arith.constant 0 : i32
    return %c0_i32, %c0_i32_0 : i32, i32
  }
  func.func @transform_2(%arg0: i32) -> (i32, i32) {
    %c0_i32 = arith.constant 0 : i32
    %c0_i32_0 = arith.constant 0 : i32
    %c0_i32_1 = arith.constant 0 : i32
    return %c0_i32, %c0_i32_0 : i32, i32
  }
  func.func @transform_3(%arg0: i32) -> (i32, i32) {
    %c0_i32 = arith.constant 0 : i32
    %c0_i32_0 = arith.constant 0 : i32
    %c0_i32_1 = arith.constant 0 : i32
    return %c0_i32, %c0_i32_0 : i32, i32
  }
  func.func @transform_4(%arg0: i32) -> (i32, i32) {
    %c0_i32 = arith.constant 0 : i32
    %c0_i32_0 = arith.constant 0 : i32
    %c0_i32_1 = arith.constant 0 : i32
    return %c0_i32, %c0_i32_0 : i32, i32
  }
  func.func @transform_5(%arg0: i32) -> (i32, i32) {
    %c0_i32 = arith.constant 0 : i32
    %c0_i32_0 = arith.constant 0 : i32
    %c0_i32_1 = arith.constant 0 : i32
    return %c0_i32, %c0_i32_0 : i32, i32
  }
  func.func @transform_6(%arg0: i32) -> (i32, i32) {
    %c0_i32 = arith.constant 0 : i32
    %c0_i32_0 = arith.constant 0 : i32
    %c0_i32_1 = arith.constant 0 : i32
    return %c0_i32, %c0_i32_0 : i32, i32
  }
  func.func @transform_7(%arg0: i32) -> (i32, i32) {
    %c0_i32 = arith.constant 0 : i32
    %c0_i32_0 = arith.constant 0 : i32
    %c0_i32_1 = arith.constant 0 : i32
    return %c0_i32, %c0_i32_0 : i32, i32
  }
  func.func @transform_8(%arg0: i32) -> (i32, i32, i32) {
    %c0_i32 = arith.constant 0 : i32
    %c0_i32_0 = arith.constant 0 : i32
    %c0_i32_1 = arith.constant 0 : i32
    return %arg0, %c0_i32, %c0_i32_0 : i32, i32, i32
  }
}

</mosaic_0001>

<bundles_post_ra>
// kernel: tpu_custom_call.1
= control target key start
LH: loop header
LB: loop body
LE: loop exit
PB: predicated region body
PF: predicated region fallthrough
CT: control target
= control target key end

     0   :  { %13 = vsyncpa [#allocation3], 0  ;;  %s2043_s0 = inlined_call_operand.hbm [shape: f32[512,256], index: 0, kind: input, shape index: {}]   ;;  %s2044_s1 = inlined_call_operand.vmem [shape: f32[256,64], index: 1, kind: input, shape index: {}]   ;;  %s2045_s2 = inlined_call_operand.vmem [shape: f32[1,64], index: 2, kind: input, shape index: {}]   ;;  %s2046_s3 = inlined_call_operand.vmem [shape: f32[1,64], index: 3, kind: input, shape index: {}]   ;;  %s2047_s4 = inlined_call_operand.vmem [shape: f32[1,64], index: 4, kind: input, shape index: {}]   ;;  %s2048_s5 = inlined_call_operand.vmem [shape: f32[1,64], index: 5, kind: input, shape index: {}]   ;;  %s2049_s6 = inlined_call_operand.vmem [shape: f32[64,10], index: 6, kind: input, shape index: {}]   ;;  %s2050_s7 = inlined_call_operand.vmem [shape: f32[1,10], index: 7, kind: input, shape index: {}]   ;;  %s2051_s8 = inlined_call_operand.hbm [shape: f32[2,1,10], index: 8, kind: output, shape index: {}]  }
   0x1   :  { %15 = vsyncpa [#allocation3 + $0x1], 0 }
   0x2   :  { %16 = vsyncpa [#allocation4], 0 }
   0x3   :  { %18 = vsyncpa [#allocation4 + $0x1], 0  ;;  %s1446_s27 = smov 0   ;;  %s1448_s28 = smov 0  }
   0x4   :  { %s1450_s29 = smov 0   ;;  %s1452_s30 = smov 0  }
   0x5 LB: > { %s1467_s9 = sadd.s32 4294967295, %s1392_s30   ;;  %s1106_s10 = sadd.s32 4294967294, %s1392_s30   ;;  %s1392_s30 = sphi %s1452_s30, %s2064_s30   ;;  %s1388_s29 = sphi %s1450_s29, %s2063_s29   ;;  %s1384_s28 = sphi %s1448_s28, %s2062_s28   ;;  %s1380_s27 = sphi %s1446_s27, %s2061_s27  }
   0x6   : > { %s1471_s11 = sadd.s32 1, %s1392_s30   ;;  %s31_s12 = sadd.s32 1, %s1388_s29 }
   0x7   : > { %s28_s13 = ssub.s32 %s1392_s30, %s1471_s11  ;;  %p38_p0 = scmp.ne.s32.totalorder %s1388_s29, %s1384_s28 }
   0x8   : > { %p29_p1 = scmp.eq.s32.totalorder %s28_s13, 0  ;;  %p39_p2 = scmp.eq.s32.totalorder %s1392_s30, 0 }
   0x9   : > { %p44_p3 = scmp.ne.s32.totalorder %s1384_s28, %s1380_s27  ;;  %p45_p4 = scmp.eq.s32.totalorder %s1467_s9, 0 }
   0xa   : > { %s1483_s14 = scalar_select %p29_p1, %s1388_s29, %s31_s12  }
   0xb   : > { %p1485_p5 = por %p39_p2, %p38_p0  ;;  %p1489_p6 = por %p45_p4, %p44_p3 }
   0xc   : > { %p215_p7 = scmp.eq.s32.totalorder %s1467_s9, 1  ;;  %p221_p8 = scmp.eq.s32.totalorder %s1106_s10, 1 }
   0xd   : > { %p1257_p10 = scmp.lt.s32.totalorder %s1392_s30, 2  ;;  %s262_s19 = sand.u32 1, %s1388_s29  }
   0xe   : > { %p1496_p11 = por %p215_p7, %p38_p0  ;;  %p1500_p12 = por %p221_p8, %p44_p3 }
   0xf   : > { %s1124_s20 = sshll.u32 %s1392_s30, 13  ;;  %s1109_s21 = sshll.u32 %s262_s19, 9 }
  0x10   : > { %s2055_s17 = scalar_select %p1496_p11, 1, 0 }
  0x11   : > { %s2056_s18 = scalar_select %p1500_p12, 1, 0 }
  0x12   : > { %s1509_s24 = scalar_lea.hbm %s2043_s0, %s1124_s20  ;;  %s266_s25 = scalar_lea.vmem [#allocation2], %s1109_s21 }
  0x13   : > { %s274_s26 = sshll.u32 %s266_s25, 4  ;;  %p1513_p13 = pnand %p1257_p10, %p1485_p5  ;;  %s1517_s26 = int_to_ptr.vmem [resolvable:$true] %s274_s26 }
  0x14   : > { %s1519_s12 = scalar_lea.sflag [#allocation3], %s262_s19  ;;  %s1296_s13 = scalar_lea.hbm %s1509_s24, 8192 }
  0x15   : > { %p1297_p0 = scmp.ne.s32.totalorder %s1509_s24, %s1296_s13  ;;  %p1298_p1 = pneg %p1513_p13 }
  0x16   : > { %s1301_s21 = scalar_lea.hbm %s2043_s0, 16384  ;;  %p1302_p4 = scmp.lt.u32.totalorder %s1509_s24, %s2043_s0 }
  0x17   : > { %p1299_p2 = pnand %p1298_p1, %p1297_p0  ;;  %p1303_p5 = scmp.lt.u32.totalorder %s1301_s21, %s1296_s13 }
  0x18   : > { %p1305_p8 = scmp.lt.u32.totalorder %s1296_s13, %s1509_s24 }
  0x19   : > { %p1300_p3 = pneg %p1299_p2  ;;  %p1304_p7 = por %p1303_p5, %p1302_p4 }
  0x1b   : > { %p1306_p10 = por %p1305_p8, %p1304_p7 }
  0x1d   : > { %p1307_p9 = pnand %p1306_p10, %p1300_p3 }
  0x1f   : > { %1310 = shalt.err (!%p1307_p9)
}
  0x20   : > { %s1311_s19 = scalar_lea.vmem %s1517_s26, 8192  ;;  %s1394_s25 = smov [#allocation2]  }
  0x21   : > { %p1312_p0 = scmp.ne.s32.totalorder %s1517_s26, %s1311_s19  ;;  %s1316_s20 = sshll.u32 %s1394_s25, 4  ;;  %s1317_s20 = int_to_ptr.vmem [resolvable:$false] %s1316_s20 }
  0x22   : > { %s1318_s15 = scalar_lea.vmem %s1317_s20, 16384  ;;  %p1319_p11 = scmp.lt.s32.totalorder %s1517_s26, %s1317_s20 }
  0x23   : > { %p1314_p2 = pnand %p1312_p0, %p1298_p1  ;;  %p1320_p4 = scmp.lt.s32.totalorder %s1318_s15, %s1311_s19 }
  0x25   : > { %p1315_p12 = pneg %p1314_p2  ;;  %p1321_p5 = por %p1320_p4, %p1319_p11 }
  0x27   : > { %p1322_p7 = pnand %p1321_p5, %p1315_p12 }
  0x29   : > { %1325 = shalt.err (!%p1322_p7)
}
  0x2a   : > { %s1395_s13 = smov 256   ;;  %s1396_s21 = smov 16  }
  0x2b   : > { %1252 = dma.hbm_to_vmem [thread:$0]  (!%p1513_p13), %s1509_s24, 8192, %s1517_s26, %s1519_s12, %s1395_s13, %s1395_s13, %s1396_s21  }
  0x2c   : > { %p1113_p9 = scmp.ge.s32.totalorder %s1392_s30, 1  ;;  %p282_p1 = scmp.lt.s32.totalorder %s1392_s30, 3 }
  0x2e   : > { %p283_p3 = pnand %p1113_p9, %p282_p1 }
  0x2f   : > { %s1550_s22 = sand.u32 (!%p283_p3), 1, %s1384_s28  }
  0x30   : > { %286 = sbr.rel (%p283_p3) target bundleno = 679 (0x2a7), region = 52  ;;  %s1114_s23 = sshll.u32 (!%p283_p3), %s1550_s22, 9 }
  0x31   : > { %s289_s19 = scalar_lea.sflag (!%p283_p3), [#allocation3], %s1550_s22  ;;  %s1554_s25 = scalar_lea.vmem (!%p283_p3), [#allocation2], %s1114_s23 }
  0x37   : > { %1371 = dma.done.wait (%p1489_p6), %s289_s19, 8192  }
  0x38   : > { %1373 = vsyncadd (%p1489_p6), %s289_s19, 4294959104  ;;  %v1397_v0 = vmov 0.0|0.0   ;;  %v389_v1 = vld [vmem:[%s2044_s1] sm:$0xff]  ;;  %v390_v2 = vld [vmem:[%s2044_s1 + $0x8] sm:$0xff]  ;;  %vm1398_vm0 = vmmov 0   ;;  %vm804_vm1 = vcmask 1040384  }
  0x39   : > { %1153 = vmatprep.subr.bf16.mxu0 %v1397_v0  ;;  %1213 = vmatprep.subr.bf16.mxu1 %v1397_v0  ;;  %v391_v3 = vld [vmem:[%s2044_s1 + $0x10] sm:$0xff]  ;;  %v1154_v4 = vpack.c.bf16 %v390_v2, %v389_v1  ;;  %v392_v5 = vld [vmem:[%s2044_s1 + $0x18] sm:$0xff]  ;;  %v393_v7 = vld [vmem:[%s2044_s1 + $0x20] sm:$0xff]  ;;  %vm919_vm2 = vcmask 523264   ;;  %s1120_s24 = sshll.u32 %s1467_s9, 4  ;;  %s323_s26 = scalar_lea.vmem [#allocation5], %s1550_s22 }
  0x3a   : > { %v1157_v6 = vpack.c.bf16 %v392_v5, %v391_v3  ;;  %v394_v8 = vld [vmem:[%s2044_s1 + $0x28] sm:$0xff]  ;;  %v395_v10 = vld [vmem:[%s2044_s1 + $0x30] sm:$0xff]  ;;  %v396_v11 = vld [vmem:[%s2044_s1 + $0x38] sm:$0xff]  ;;  %s1040_s10 = sshll.u32 %s323_s26, 4  ;;  %vm1025_vm3 = vcmask 73728   ;;  %s1999_s15 = scalar_lea.hbm %s2051_s8, %s1120_s24  ;;  %s2001_s10 = int_to_ptr.vmem [resolvable:$true] %s1040_s10 }
  0x3b   : > { %1155 = vmatpush1.bf16.msra.mxu0 %v1154_v4  ;;  %1229 = vmatpush1.bf16.msra.mxu1 %v1154_v4  ;;  %v1160_v9 = vpack.c.bf16 %v394_v8, %v393_v7  ;;  %v326_v12 = vld [vmem:[%s1554_s25 + $0x8] sm:$0xff]  ;;  %v1163_v13 = vpack.c.bf16 %v396_v11, %v395_v10  ;;  %v360_v14 = vld [vmem:[%s1554_s25 + $0x118] sm:$0xff]  ;;  %v397_v15 = vld [vmem:[%s2044_s1 + $0x40] sm:$0xff]  ;;  %s1326_s16 = scalar_lea.vmem %s2001_s10, 16  ;;  %p2058_p11 = scmp.ne.s32.totalorder %s2055_s17, 0 }
  0x3c   : > { %1156 = vmatprep.subr.bf16.mxu0 %v1397_v0  ;;  %1214 = vmatprep.subr.bf16.mxu1 %v1397_v0  ;;  %v398_v16 = vld [vmem:[%s2044_s1 + $0x48] sm:$0xff]  ;;  %v399_v18 = vld [vmem:[%s2044_s1 + $0x50] sm:$0xff]  ;;  %v400_v19 = vld [vmem:[%s2044_s1 + $0x58] sm:$0xff]  ;;  %p1327_p6 = scmp.ne.s32.totalorder %s2001_s10, %s1326_s16  ;;  %s1400_s9 = smov [#allocation5]  }
  0x3d   : > { %485 = vmatprep.mubr.f32.mxu0 %v326_v12  ;;  %570 = vmatprep.mubr.f32.mxu1 %v360_v14  ;;  %v1166_v17 = vpack.c.bf16 %v398_v16, %v397_v15  ;;  %v1169_v20 = vpack.c.bf16 %v400_v19, %v399_v18  ;;  %v401_v21 = vld [vmem:[%s2044_s1 + $0x60] sm:$0xff]  ;;  %v402_v22 = vld [vmem:[%s2044_s1 + $0x68] sm:$0xff]  ;;  %v403_v24 = vld [vmem:[%s2044_s1 + $0x70] sm:$0xff]  ;;  %s1330_s13 = sshll.u32 %s1400_s9, 4  ;;  %s1331_s13 = int_to_ptr.vmem [resolvable:$false] %s1330_s13 }
  0x3e   : > { %v1172_v23 = vpack.c.bf16 %v402_v22, %v401_v21  ;;  %v404_v25 = vld [vmem:[%s2044_s1 + $0x78] sm:$0xff]  ;;  %v405_v27 = vld [vmem:[%s2044_s1 + $0x80] sm:$0xff]  ;;  %v406_v28 = vld [vmem:[%s2044_s1 + $0x88] sm:$0xff]  ;;  %p1328_p12 = pnand %p1327_p6, %p2058_p11  ;;  %s1332_s21 = scalar_lea.vmem %s1331_s13, 32 }
  0x3f   : > { %1158 = vmatpush1.bf16.msra.mxu0 %v1157_v6  ;;  %1230 = vmatpush1.bf16.msra.mxu1 %v1157_v6  ;;  %v1175_v26 = vpack.c.bf16 %v404_v25, %v403_v24  ;;  %v1178_v29 = vpack.c.bf16 %v406_v28, %v405_v27  ;;  %v407_v30 = vld [vmem:[%s2044_s1 + $0x90] sm:$0xff]  ;;  %v408_v31 = vld [vmem:[%s2044_s1 + $0x98] sm:$0xff]  ;;  %v409_v33 = vld [vmem:[%s2044_s1 + $0xa0] sm:$0xff]  ;;  %p1333_p8 = scmp.lt.s32.totalorder %s2001_s10, %s1331_s13  ;;  %p1334_p10 = scmp.lt.s32.totalorder %s1332_s21, %s1326_s16 }
  0x40   : > { %1159 = vmatprep.subr.bf16.mxu0 %v1397_v0  ;;  %1215 = vmatprep.subr.bf16.mxu1 %v1397_v0  ;;  %v1181_v32 = vpack.c.bf16 %v408_v31, %v407_v30  ;;  %v410_v34 = vld [vmem:[%s2044_s1 + $0xa8] sm:$0xff]  ;;  %v411_v36 = vld [vmem:[%s2044_s1 + $0xb0] sm:$0xff]  ;;  %v412_v37 = vld [vmem:[%s2044_s1 + $0xb8] sm:$0xff]  ;;  %p1329_p13 = pneg %p1328_p12 }
  0x41   : > { %v1184_v35 = vpack.c.bf16 %v410_v34, %v409_v33  ;;  %v1187_v38 = vpack.c.bf16 %v412_v37, %v411_v36  ;;  %v413_v39 = vld [vmem:[%s2044_s1 + $0xc0] sm:$0xff]  ;;  %v414_v40 = vld [vmem:[%s2044_s1 + $0xc8] sm:$0xff]  ;;  %v415_v42 = vld [vmem:[%s2044_s1 + $0xd0] sm:$0xff]  ;;  %p1335_p0 = por %p1334_p10, %p1333_p8 }
  0x42   : > { %v1190_v41 = vpack.c.bf16 %v414_v40, %v413_v39  ;;  %v416_v43 = vld [vmem:[%s2044_s1 + $0xd8] sm:$0xff]  ;;  %v417_v45 = vld [vmem:[%s2044_s1 + $0xe0] sm:$0xff]  ;;  %v418_v46 = vld [vmem:[%s2044_s1 + $0xe8] sm:$0xff] }
  0x43   : > { %1161 = vmatpush1.bf16.msra.mxu0 %v1160_v9  ;;  %1231 = vmatpush1.bf16.msra.mxu1 %v1160_v9  ;;  %v1193_v44 = vpack.c.bf16 %v416_v43, %v415_v42  ;;  %v1196_v47 = vpack.c.bf16 %v418_v46, %v417_v45  ;;  %v419_v48 = vld [vmem:[%s2044_s1 + $0xf0] sm:$0xff]  ;;  %v420_v49 = vld [vmem:[%s2044_s1 + $0xf8] sm:$0xff]  ;;  %v325_v51 = vld [vmem:[%s1554_s25] sm:$0xff]  ;;  %p1336_p2 = pnand %p1335_p0, %p1329_p13 }
  0x44   : > { %1162 = vmatprep.subr.bf16.mxu0 %v1397_v0  ;;  %1216 = vmatprep.subr.bf16.mxu1 %v1397_v0  ;;  %v1199_v50 = vpack.c.bf16 %v420_v49, %v419_v48  ;;  %v359_v52 = vld [vmem:[%s1554_s25 + $0x110] sm:$0xff]  ;;  %v328_v53 = vld [vmem:[%s1554_s25 + $0x18] sm:$0xff]  ;;  %v362_v54 = vld [vmem:[%s1554_s25 + $0x128] sm:$0xff] }
  0x45   : > { %v327_v55 = vld [vmem:[%s1554_s25 + $0x10] sm:$0xff]  ;;  %v361_v56 = vld [vmem:[%s1554_s25 + $0x120] sm:$0xff]  ;;  %v330_v57 = vld [vmem:[%s1554_s25 + $0x28] sm:$0xff] }
  0x46   : > { %v364_v58 = vld [vmem:[%s1554_s25 + $0x138] sm:$0xff]  ;;  %v329_v59 = vld [vmem:[%s1554_s25 + $0x20] sm:$0xff]  ;;  %v363_v60 = vld [vmem:[%s1554_s25 + $0x130] sm:$0xff] }
  0x47   : > { %1164 = vmatpush1.bf16.msra.mxu0 %v1163_v13  ;;  %1232 = vmatpush1.bf16.msra.mxu1 %v1163_v13  ;;  %v332_v61 = vld [vmem:[%s1554_s25 + $0x38] sm:$0xff]  ;;  %v366_v62 = vld [vmem:[%s1554_s25 + $0x148] sm:$0xff]  ;;  %v331_v63 = vld [vmem:[%s1554_s25 + $0x30] sm:$0xff] }
  0x48   : > { %1165 = vmatprep.subr.bf16.mxu0 %v1397_v0  ;;  %1217 = vmatprep.subr.bf16.mxu1 %v1397_v0  ;;  %v365_v1 = vld [vmem:[%s1554_s25 + $0x140] sm:$0xff]  ;;  %v334_v2 = vld [vmem:[%s1554_s25 + $0x48] sm:$0xff]  ;;  %v368_v3 = vld [vmem:[%s1554_s25 + $0x158] sm:$0xff] }
  0x49   : > { %v333_v4 = vld [vmem:[%s1554_s25 + $0x40] sm:$0xff]  ;;  %v367_v5 = vld [vmem:[%s1554_s25 + $0x150] sm:$0xff]  ;;  %v336_v6 = vld [vmem:[%s1554_s25 + $0x58] sm:$0xff] }
  0x4a   : > { %v370_v7 = vld [vmem:[%s1554_s25 + $0x168] sm:$0xff]  ;;  %v335_v8 = vld [vmem:[%s1554_s25 + $0x50] sm:$0xff]  ;;  %v369_v9 = vld [vmem:[%s1554_s25 + $0x160] sm:$0xff] }
  0x4b   : > { %1167 = vmatpush1.bf16.msra.mxu0 %v1166_v17  ;;  %1233 = vmatpush1.bf16.msra.mxu1 %v1166_v17  ;;  %v338_v10 = vld [vmem:[%s1554_s25 + $0x68] sm:$0xff]  ;;  %v372_v11 = vld [vmem:[%s1554_s25 + $0x178] sm:$0xff]  ;;  %v337_v12 = vld [vmem:[%s1554_s25 + $0x60] sm:$0xff] }
  0x4c   : > { %1168 = vmatprep.subr.bf16.mxu0 %v1397_v0  ;;  %1218 = vmatprep.subr.bf16.mxu1 %v1397_v0  ;;  %v371_v13 = vld [vmem:[%s1554_s25 + $0x170] sm:$0xff]  ;;  %v340_v14 = vld [vmem:[%s1554_s25 + $0x78] sm:$0xff]  ;;  %v374_v15 = vld [vmem:[%s1554_s25 + $0x188] sm:$0xff] }
  0x4d   : > { %v339_v16 = vld [vmem:[%s1554_s25 + $0x70] sm:$0xff]  ;;  %v373_v17 = vld [vmem:[%s1554_s25 + $0x180] sm:$0xff]  ;;  %v342_v18 = vld [vmem:[%s1554_s25 + $0x88] sm:$0xff] }
  0x4e   : > { %v376_v19 = vld [vmem:[%s1554_s25 + $0x198] sm:$0xff]  ;;  %v375_v21 = vld [vmem:[%s1554_s25 + $0x190] sm:$0xff]  ;;  %v377_v25 = vld [vmem:[%s1554_s25 + $0x1a0] sm:$0xff] }
  0x4f   : > { %1170 = vmatpush1.bf16.msra.mxu0 %v1169_v20  ;;  %1234 = vmatpush1.bf16.msra.mxu1 %v1169_v20  ;;  %v341_v20 = vld [vmem:[%s1554_s25 + $0x80] sm:$0xff]  ;;  %v344_v22 = vld [vmem:[%s1554_s25 + $0x98] sm:$0xff]  ;;  %v343_v24 = vld [vmem:[%s1554_s25 + $0x90] sm:$0xff] }
  0x50   : > { %1171 = vmatprep.subr.bf16.mxu0 %v1397_v0  ;;  %1219 = vmatprep.subr.bf16.mxu1 %v1397_v0  ;;  %v380_v27 = vld [vmem:[%s1554_s25 + $0x1b8] sm:$0xff]  ;;  %v345_v28 = vld [vmem:[%s1554_s25 + $0xa0] sm:$0xff]  ;;  %v382_v31 = vld [vmem:[%s1554_s25 + $0x1c8] sm:$0xff] }
  0x51   : > { %v348_v30 = vld [vmem:[%s1554_s25 + $0xb8] sm:$0xff]  ;;  %v381_v33 = vld [vmem:[%s1554_s25 + $0x1c0] sm:$0xff]  ;;  %v350_v34 = vld [vmem:[%s1554_s25 + $0xc8] sm:$0xff] }
  0x52   : > { %v349_v36 = vld [vmem:[%s1554_s25 + $0xc0] sm:$0xff]  ;;  %v383_v37 = vld [vmem:[%s1554_s25 + $0x1d0] sm:$0xff]  ;;  %v386_v39 = vld [vmem:[%s1554_s25 + $0x1e8] sm:$0xff] }
  0x53   : > { %1173 = vmatpush1.bf16.msra.mxu0 %v1172_v23  ;;  %1235 = vmatpush1.bf16.msra.mxu1 %v1172_v23  ;;  %v378_v23 = vld [vmem:[%s1554_s25 + $0x1a8] sm:$0xff]  ;;  %v351_v40 = vld [vmem:[%s1554_s25 + $0xd0] sm:$0xff]  ;;  %v388_v43 = vld [vmem:[%s1554_s25 + $0x1f8] sm:$0xff] }
  0x54   : > { %1174 = vmatprep.subr.bf16.mxu0 %v1397_v0  ;;  %1220 = vmatprep.subr.bf16.mxu1 %v1397_v0  ;;  %v354_v42 = vld [vmem:[%s1554_s25 + $0xe8] sm:$0xff]  ;;  %v387_v45 = vld [vmem:[%s1554_s25 + $0x1f0] sm:$0xff]  ;;  %v356_v46 = vld [vmem:[%s1554_s25 + $0xf8] sm:$0xff] }
  0x55   : > { %v358_v48 = vld [vmem:[%s1554_s25 + $0x108] sm:$0xff]  ;;  %v357_v49 = vld [vmem:[%s1554_s25 + $0x100] sm:$0xff] }
  0x57   : > { %1176 = vmatpush1.bf16.msra.mxu0 %v1175_v26  ;;  %1236 = vmatpush1.bf16.msra.mxu1 %v1175_v26  ;;  %v346_v26 = vld [vmem:[%s1554_s25 + $0xa8] sm:$0xff] }
  0x58   : > { %1177 = vmatprep.subr.bf16.mxu0 %v1397_v0  ;;  %1221 = vmatprep.subr.bf16.mxu1 %v1397_v0 }
  0x5b   : > { %1179 = vmatpush1.bf16.msra.mxu0 %v1178_v29  ;;  %1237 = vmatpush1.bf16.msra.mxu1 %v1178_v29  ;;  %v379_v29 = vld [vmem:[%s1554_s25 + $0x1b0] sm:$0xff] }
  0x5c   : > { %1180 = vmatprep.subr.bf16.mxu0 %v1397_v0  ;;  %1222 = vmatprep.subr.bf16.mxu1 %v1397_v0 }
  0x5f   : > { %1182 = vmatpush1.bf16.msra.mxu0 %v1181_v32  ;;  %1238 = vmatpush1.bf16.msra.mxu1 %v1181_v32  ;;  %v347_v32 = vld [vmem:[%s1554_s25 + $0xb0] sm:$0xff] }
  0x60   : > { %1183 = vmatprep.subr.bf16.mxu0 %v1397_v0  ;;  %1223 = vmatprep.subr.bf16.mxu1 %v1397_v0 }
  0x63   : > { %1185 = vmatpush1.bf16.msra.mxu0 %v1184_v35  ;;  %1239 = vmatpush1.bf16.msra.mxu1 %v1184_v35  ;;  %v384_v35 = vld [vmem:[%s1554_s25 + $0x1d8] sm:$0xff] }
  0x64   : > { %1186 = vmatprep.subr.bf16.mxu0 %v1397_v0  ;;  %1224 = vmatprep.subr.bf16.mxu1 %v1397_v0 }
  0x67   : > { %1188 = vmatpush1.bf16.msra.mxu0 %v1187_v38  ;;  %1240 = vmatpush1.bf16.msra.mxu1 %v1187_v38  ;;  %v352_v38 = vld [vmem:[%s1554_s25 + $0xd8] sm:$0xff] }
  0x68   : > { %1189 = vmatprep.subr.bf16.mxu0 %v1397_v0  ;;  %1225 = vmatprep.subr.bf16.mxu1 %v1397_v0 }
  0x6b   : > { %1191 = vmatpush1.bf16.msra.mxu0 %v1190_v41  ;;  %1241 = vmatpush1.bf16.msra.mxu1 %v1190_v41  ;;  %v385_v41 = vld [vmem:[%s1554_s25 + $0x1e0] sm:$0xff] }
  0x6c   : > { %1192 = vmatprep.subr.bf16.mxu0 %v1397_v0  ;;  %1226 = vmatprep.subr.bf16.mxu1 %v1397_v0 }
  0x6f   : > { %1194 = vmatpush1.bf16.msra.mxu0 %v1193_v44  ;;  %1242 = vmatpush1.bf16.msra.mxu1 %v1193_v44  ;;  %v353_v44 = vld [vmem:[%s1554_s25 + $0xe0] sm:$0xff] }
  0x70   : > { %1195 = vmatprep.subr.bf16.mxu0 %v1397_v0  ;;  %1227 = vmatprep.subr.bf16.mxu1 %v1397_v0 }
  0x73   : > { %1197 = vmatpush1.bf16.msra.mxu0 %v1196_v47  ;;  %1243 = vmatpush1.bf16.msra.mxu1 %v1196_v47  ;;  %v355_v47 = vld [vmem:[%s1554_s25 + $0xf0] sm:$0xff]  ;;  %s1028_s25 = scalar_lea.sflag [#allocation4], %s1550_s22 }
  0x74   : > { %1198 = vmatprep.subr.bf16.mxu0 %v1397_v0  ;;  %1228 = vmatprep.subr.bf16.mxu1 %v1397_v0 }
  0x77   : > { %1200 = vmatpush1.bf16.msra.mxu0 %v1199_v50  ;;  %1244 = vmatpush1.bf16.msra.mxu1 %v1199_v50  ;;  %v943_v50 = vld [vmem:[%s2049_s6] sm:$0xff] }
  0x78   : > { %1201 = vmatprep.subr.bf16.mxu1 %v1397_v0 }
  0x7a   : > { %486 = vmatmul.mubr.f32.vlgmr.msra.gmra.mrb[0].mxu0 %v325_v51  ;;  %571 = vmatmul.mubr.f32.vlgmr.msra.gmra.mrb[0].mxu1 %v359_v52  ;;  %v944_v51 = vld [vmem:[%s2049_s6 + $0x8] sm:$0xff] }
  0x7b   : > { %490 = vmatprep.mubr.f32.mxu0 %v328_v53  ;;  %575 = vmatprep.mubr.f32.mxu1 %v362_v54  ;;  %v1202_v52 = vpack.c.bf16 %v944_v51, %v943_v50  ;;  %v945_v53 = vld [vmem:[%s2049_s6 + $0x10] sm:$0xff]  ;;  %v946_v54 = vld [vmem:[%s2049_s6 + $0x18] sm:$0xff] }
  0x7d   : > { %1203 = vmatpush3.bf16.msra.mxu1 %v1202_v52 }
  0x7e   : > { %491 = vmatmul.mubr.f32.gmra.mrb[2].mxu0 %v327_v55  ;;  %576 = vmatmul.mubr.f32.gmra.mrb[2].mxu1 %v361_v56  ;;  %v947_v55 = vld [vmem:[%s2049_s6 + $0x20] sm:$0xff]  ;;  %v1205_v56 = vpack.c.bf16 %v946_v54, %v945_v53 }
  0x7f   : > { %495 = vmatprep.mubr.f32.mxu0 %v330_v57  ;;  %580 = vmatprep.mubr.f32.mxu1 %v364_v58  ;;  %v948_v57 = vld [vmem:[%s2049_s6 + $0x28] sm:$0xff] }
  0x80   : > { %1204 = vmatprep.subr.bf16.mxu1 %v1397_v0  ;;  %v1208_v58 = vpack.c.bf16 %v948_v57, %v947_v55 }
  0x81   : > { %1206 = vmatpush3.bf16.msra.mxu1 %v1205_v56 }
  0x82   : > { %496 = vmatmul.mubr.f32.gmra.mrb[4].mxu0 %v329_v59  ;;  %581 = vmatmul.mubr.f32.gmra.mrb[4].mxu1 %v363_v60  ;;  %v949_v59 = vld [vmem:[%s2049_s6 + $0x30] sm:$0xff]  ;;  %v950_v60 = vld [vmem:[%s2049_s6 + $0x38] sm:$0xff] }
  0x83   : > { %500 = vmatprep.mubr.f32.mxu0 %v332_v61  ;;  %585 = vmatprep.mubr.f32.mxu1 %v366_v62  ;;  %v1211_v61 = vpack.c.bf16 %v950_v60, %v949_v59  ;;  %v1399_v62 = vmov 0.0  }
  0x84   : > { %1207 = vmatprep.subr.bf16.mxu1 %v1397_v0 }
  0x85   : > { %1209 = vmatpush3.bf16.msra.mxu1 %v1208_v58 }
  0x86   : > { %501 = vmatmul.mubr.f32.gmra.mrb[6].mxu0 %v331_v63  ;;  %586 = vmatmul.mubr.f32.gmra.mrb[6].mxu1 %v365_v1 }
  0x87   : > { %505 = vmatprep.mubr.f32.mxu0 %v334_v2  ;;  %590 = vmatprep.mubr.f32.mxu1 %v368_v3 }
  0x88   : > { %1210 = vmatprep.subr.bf16.mxu1 %v1397_v0 }
  0x89   : > { %1212 = vmatpush3.bf16.msra.mxu1 %v1211_v61 }
  0x8a   : > { %506 = vmatmul.mubr.f32.gmra.mrb[8].mxu0 %v333_v4  ;;  %591 = vmatmul.mubr.f32.gmra.mrb[8].mxu1 %v367_v5 }
  0x8b   : > { %510 = vmatprep.mubr.f32.mxu0 %v336_v6  ;;  %595 = vmatprep.mubr.f32.mxu1 %v370_v7 }
  0x8e   : > { %511 = vmatmul.mubr.f32.gmra.mrb[10].mxu0 %v335_v8  ;;  %596 = vmatmul.mubr.f32.gmra.mrb[10].mxu1 %v369_v9 }
  0x8f   : > { %515 = vmatprep.mubr.f32.mxu0 %v338_v10  ;;  %600 = vmatprep.mubr.f32.mxu1 %v372_v11 }
  0x92   : > { %516 = vmatmul.mubr.f32.gmra.mrb[12].mxu0 %v337_v12  ;;  %601 = vmatmul.mubr.f32.gmra.mrb[12].mxu1 %v371_v13 }
  0x93   : > { %520 = vmatprep.mubr.f32.mxu0 %v340_v14  ;;  %605 = vmatprep.mubr.f32.mxu1 %v374_v15 }
  0x96   : > { %521 = vmatmul.mubr.f32.gmra.mrb[14].mxu0 %v339_v16  ;;  %606 = vmatmul.mubr.f32.gmra.mrb[14].mxu1 %v373_v17 }
  0x97   : > { %525 = vmatprep.mubr.f32.mxu0 %v342_v18  ;;  %610 = vmatprep.mubr.f32.mxu1 %v376_v19  ;;  %v1784_v19 = vld [vmem:[%s2045_s2] ss:$0 sm:$0xff] }
  0x9a   : > { %526 = vmatmul.mubr.f32.gmra.mrb[16].mxu0 %v341_v20  ;;  %611 = vmatmul.mubr.f32.gmra.mrb[16].mxu1 %v375_v21 }
  0x9b   : > { %530 = vmatprep.mubr.f32.mxu0 %v344_v22  ;;  %615 = vmatprep.mubr.f32.mxu1 %v378_v23 }
  0x9e   : > { %531 = vmatmul.mubr.f32.gmra.mrb[18].mxu0 %v343_v24  ;;  %616 = vmatmul.mubr.f32.gmra.mrb[18].mxu1 %v377_v25  ;;  %v1790_v25 = vld [vmem:[%s2046_s3] ss:$0 sm:$0xff] }
  0x9f   : > { %535 = vmatprep.mubr.f32.mxu0 %v346_v26  ;;  %620 = vmatprep.mubr.f32.mxu1 %v380_v27 }
  0xa2   : > { %536 = vmatmul.mubr.f32.gmra.mrb[20].mxu0 %v345_v28  ;;  %621 = vmatmul.mubr.f32.gmra.mrb[20].mxu1 %v379_v29 }
  0xa3   : > { %540 = vmatprep.mubr.f32.mxu0 %v348_v30  ;;  %625 = vmatprep.mubr.f32.mxu1 %v382_v31 }
  0xa6   : > { %541 = vmatmul.mubr.f32.gmra.mrb[22].mxu0 %v347_v32  ;;  %626 = vmatmul.mubr.f32.gmra.mrb[22].mxu1 %v381_v33 }
  0xa7   : > { %545 = vmatprep.mubr.f32.mxu0 %v350_v34  ;;  %630 = vmatprep.mubr.f32.mxu1 %v384_v35 }
  0xaa   : > { %546 = vmatmul.mubr.f32.gmra.mrb[24].mxu0 %v349_v36  ;;  %631 = vmatmul.mubr.f32.gmra.mrb[24].mxu1 %v383_v37 }
  0xab   : > { %550 = vmatprep.mubr.f32.mxu0 %v352_v38  ;;  %635 = vmatprep.mubr.f32.mxu1 %v386_v39 }
  0xae   : > { %551 = vmatmul.mubr.f32.gmra.mrb[26].mxu0 %v351_v40  ;;  %636 = vmatmul.mubr.f32.gmra.mrb[26].mxu1 %v385_v41 }
  0xaf   : > { %555 = vmatprep.mubr.f32.mxu0 %v354_v42  ;;  %640 = vmatprep.mubr.f32.mxu1 %v388_v43 }
  0xb2   : > { %556 = vmatmul.mubr.f32.gmra.mrb[28].mxu0 %v353_v44  ;;  %641 = vmatmul.mubr.f32.gmra.mrb[28].mxu1 %v387_v45 }
  0xb3   : > { %560 = vmatprep.mubr.f32.mxu0 %v356_v46  ;;  %1150 = vmatprep.mubr.msk.f32.mxu1 %vm1398_vm0, %v1399_v62 }
  0xb6   : > { %561 = vmatmul.mubr.f32.gmra.mrb[30].mxu0 %v355_v47 }
  0xb7   : > { %565 = vmatprep.mubr.f32.mxu0 %v358_v48 }
  0xba   : > { %566 = vmatmul.mubr.f32.gmra.mrb[32].mxu0 %v357_v49 }
 0x14d   : > { %v487_v63 = vpop.f32.mrb[0].mxu0  ;;  %v572_v1 = vpop.f32.mrb[0].mxu1 }
 0x14e   : > { %v489_v2 = vpop.f32.mrb[1].mxu0  ;;  %v574_v3 = vpop.f32.mrb[1].mxu1  ;;  %v653_v24 = vmul.f32 %v1784_v19, %v487_v63  ;;  %v670_v31 = vmul.f32 %v1784_v19, %v572_v1 }
 0x150   : > { %v692_v33 = vadd.f32 %v1790_v25, %v653_v24  ;;  %v709_v43 = vadd.f32 %v1790_v25, %v670_v31 }
 0x151   : > { %v492_v4 = vpop.f32.mrb[2].mxu0  ;;  %v577_v5 = vpop.f32.mrb[2].mxu1 }
 0x152   : > { %v494_v6 = vpop.f32.mrb[3].mxu0  ;;  %v579_v7 = vpop.f32.mrb[3].mxu1  ;;  %v654_v30 = vmul.f32 %v1784_v19, %v492_v4  ;;  %v671_v32 = vmul.f32 %v1784_v19, %v577_v5  ;;  %v724_v45 = vmax.f32 %v692_v33, 0.0  ;;  %v741_v61 = vmax.f32 %v709_v43, 0.0 }
 0x154   : > { %v1807_v42 = vadd.f32 %v1790_v25, %v654_v30  ;;  %v1811_v44 = vadd.f32 %v1790_v25, %v671_v32 }
 0x155   : > { %v497_v8 = vpop.f32.mrb[4].mxu0  ;;  %v582_v9 = vpop.f32.mrb[4].mxu1 }
 0x156   : > { %v499_v10 = vpop.f32.mrb[5].mxu0  ;;  %v584_v11 = vpop.f32.mrb[5].mxu1  ;;  %v655_v34 = vmul.f32 %v1784_v19, %v497_v8  ;;  %v672_v36 = vmul.f32 %v1784_v19, %v582_v9  ;;  %v725_v60 = vmax.f32 %v1807_v42, 0.0  ;;  %v742_v63 = vmax.f32 %v1811_v44, 0.0 }
 0x158   : > { %v1814_v46 = vadd.f32 %v1790_v25, %v655_v34  ;;  %v1824_v50 = vadd.f32 %v1790_v25, %v672_v36 }
 0x159   : > { %v502_v12 = vpop.f32.mrb[6].mxu0  ;;  %v587_v13 = vpop.f32.mrb[6].mxu1 }
 0x15a   : > { %v504_v0 = vpop.f32.mrb[7].mxu0  ;;  %v589_v14 = vpop.f32.mrb[7].mxu1  ;;  %v656_v35 = vmul.f32 %v1784_v19, %v502_v12  ;;  %v673_v51 = vmul.f32 %v1784_v19, %v587_v13  ;;  %v726_v2 = vmax.f32 %v1814_v46, 0.0  ;;  %v743_v8 = vmax.f32 %v1824_v50, 0.0 }
 0x15c   : > { %v1820_v48 = vadd.f32 %v1790_v25, %v656_v35  ;;  %v1845_v9 = vadd.f32 %v1790_v25, %v673_v51 }
 0x15d   : > { %v507_v15 = vpop.f32.mrb[8].mxu0  ;;  %v592_v16 = vpop.f32.mrb[8].mxu1 }
 0x15e   : > { %v509_v17 = vpop.f32.mrb[9].mxu0  ;;  %v594_v18 = vpop.f32.mrb[9].mxu1  ;;  %v657_v49 = vmul.f32 %v1784_v19, %v507_v15  ;;  %v674_v54 = vmul.f32 %v1784_v19, %v592_v16  ;;  %v727_v6 = vmax.f32 %v1820_v48, 0.0  ;;  %v744_v31 = vmax.f32 %v1845_v9, 0.0 }
 0x160   : > { %v1841_v7 = vadd.f32 %v1790_v25, %v657_v49  ;;  %v1848_v12 = vadd.f32 %v1790_v25, %v674_v54 }
 0x161   : > { %v512_v20 = vpop.f32.mrb[10].mxu0  ;;  %v597_v21 = vpop.f32.mrb[10].mxu1 }
 0x162   : > { %v514_v22 = vpop.f32.mrb[11].mxu0  ;;  %v599_v23 = vpop.f32.mrb[11].mxu1  ;;  %v658_v1 = vmul.f32 %v1784_v19, %v512_v20  ;;  %v675_v18 = vmul.f32 %v1784_v19, %v597_v21  ;;  %v728_v30 = vmax.f32 %v1841_v7, 0.0  ;;  %v745_v35 = vmax.f32 %v1848_v12, 0.0 }
 0x164   : > { %v1852_v17 = vadd.f32 %v1790_v25, %v658_v1  ;;  %v1874_v42 = vadd.f32 %v1790_v25, %v675_v18 }
 0x165   : > { %v1792_v26 = vpop.f32.mrb[12].mxu0  ;;  %v1794_v27 = vpop.f32.mrb[12].mxu1 }
 0x166   : > { %v519_v28 = vpop.f32.mrb[13].mxu0  ;;  %v604_v29 = vpop.f32.mrb[13].mxu1  ;;  %v729_v46 = vmax.f32 %v1852_v17, 0.0  ;;  %v659_v9 = vmul.f32 %v1784_v19, %v1792_v26 }
 0x169   : > { %v1803_v37 = vpop.f32.mrb[14].mxu0  ;;  %v607_v38 = vpop.f32.mrb[14].mxu1 }
 0x16a   : > { %v524_v39 = vpop.f32.mrb[15].mxu0  ;;  %v677_v40 = vmul.f32 %v1784_v19, %v607_v38  ;;  %v609_v41 = vpop.f32.mrb[15].mxu1  ;;  %v660_v12 = vmul.f32 %v1784_v19, %v1803_v37 }
 0x16c   : > { %v1817_v47 = vadd.f32 %v1790_v25, %v677_v40 }
 0x16d   : > { %v527_v52 = vpop.f32.mrb[16].mxu0  ;;  %v612_v53 = vpop.f32.mrb[16].mxu1 }
 0x16e   : > { %v748_v55 = vmax.f32 %v1817_v47, 0.0  ;;  %v661_v56 = vmul.f32 %v1784_v19, %v527_v52  ;;  %v678_v57 = vmul.f32 %v1784_v19, %v612_v53  ;;  %v529_v58 = vpop.f32.mrb[17].mxu0  ;;  %v614_v59 = vpop.f32.mrb[17].mxu1 }
 0x170   : > { %v821_v3 = vrot.slane %v748_v55, 7  ;;  %v700_v4 = vadd.f32 %v1790_v25, %v661_v56  ;;  %v717_v5 = vadd.f32 %v1790_v25, %v678_v57 }
 0x171   : > { %v532_v10 = vpop.f32.mrb[18].mxu0  ;;  %v617_v11 = vpop.f32.mrb[18].mxu1 }
 0x172   : > { %v732_v13 = vmax.f32 %v700_v4, 0.0  ;;  %v749_v0 = vmax.f32 %v717_v5, 0.0  ;;  %v662_v14 = vmul.f32 %v1784_v19, %v532_v10  ;;  %v534_v15 = vpop.f32.mrb[19].mxu0  ;;  %v619_v16 = vpop.f32.mrb[19].mxu1  ;;  %v1856_v20 = vsel %vm804_vm1, 0.0, %v821_v3 }
 0x173   : > { %v679_v22 = vmul.f32 %v1784_v19, %v617_v11  ;;  %v746_v15 = vmax.f32 %v1874_v42, 0.0 }
 0x174   : > { %v1859_v23 = vmax.f32 %v724_v45, %v732_v13  ;;  %v788_v24 = vrot.slane %v732_v13, 7  ;;  %v1861_v28 = vmax.f32 %v741_v61, %v749_v0  ;;  %v822_v29 = vrot.slane %v749_v0, 7 }
 0x175   : > { %v701_v32 = vadd.f32 %v1790_v25, %v662_v14  ;;  %v718_v33 = vadd.f32 %v1790_v25, %v679_v22  ;;  %v537_v21 = vpop.f32.mrb[20].mxu0  ;;  %v622_v34 = vpop.f32.mrb[20].mxu1 }
 0x176   : > { %v1869_v36 = vsel %vm804_vm1, 0.0, %v788_v24  ;;  %v663_v38 = vmul.f32 %v1784_v19, %v537_v21  ;;  %v680_v39 = vmul.f32 %v1784_v19, %v622_v34  ;;  %v539_v40 = vpop.f32.mrb[21].mxu0  ;;  %v624_v41 = vpop.f32.mrb[21].mxu1  ;;  %v1880_v49 = vsel %vm804_vm1, 0.0, %v822_v29 }
 0x177   : > { %v845_v43 = vmax.f32 %v1869_v36, %v1856_v20  ;;  %v733_v44 = vmax.f32 %v701_v32, 0.0  ;;  %v750_v45 = vmax.f32 %v718_v33, 0.0  ;;  %v676_v34 = vmul.f32 %v1784_v19, %v1794_v27 }
 0x178   : > { %v702_v50 = vadd.f32 %v1790_v25, %v663_v38  ;;  %v719_v51 = vadd.f32 %v1790_v25, %v680_v39 }
 0x179   : > { %v757_v52 = vmax.f32 %v725_v60, %v733_v44  ;;  %v789_v53 = vrot.slane %v733_v44, 7  ;;  %v1884_v54 = vmax.f32 %v742_v63, %v750_v45  ;;  %v823_v56 = vrot.slane %v750_v45, 7  ;;  %v542_v57 = vpop.f32.mrb[22].mxu0  ;;  %v627_v58 = vpop.f32.mrb[22].mxu1 }
 0x17a   : > { %v734_v59 = vmax.f32 %v702_v50, 0.0  ;;  %v751_v61 = vmax.f32 %v719_v51, 0.0  ;;  %v664_v1 = vmul.f32 %v1784_v19, %v542_v57  ;;  %v681_v3 = vmul.f32 %v1784_v19, %v627_v58  ;;  %v544_v4 = vpop.f32.mrb[23].mxu0  ;;  %v629_v5 = vpop.f32.mrb[23].mxu1 }
 0x17b   : > { %v773_v10 = vmax.f32 %v757_v52, %v1861_v28  ;;  %v806_v60 = vsel %vm804_vm1, 0.0, %v789_v53  ;;  %v1893_v63 = vsel %vm804_vm1, 0.0, %v823_v56 }
 0x17c   : > { %v846_v11 = vmax.f32 %v806_v60, %v1880_v49  ;;  %v758_v13 = vmax.f32 %v726_v2, %v734_v59  ;;  %v790_v0 = vrot.slane %v734_v59, 7  ;;  %v1896_v14 = vmax.f32 %v743_v8, %v751_v61 }
 0x17d   : > { %v824_v16 = vrot.slane %v751_v61, 7  ;;  %v703_v18 = vadd.f32 %v1790_v25, %v664_v1  ;;  %v720_v26 = vadd.f32 %v1790_v25, %v681_v3  ;;  %v547_v22 = vpop.f32.mrb[24].mxu0  ;;  %v632_v24 = vpop.f32.mrb[24].mxu1 }
 0x17e   : > { %v774_v29 = vmax.f32 %v758_v13, %v1884_v54  ;;  %v807_v32 = vsel %vm804_vm1, 0.0, %v790_v0  ;;  %v665_v33 = vmul.f32 %v1784_v19, %v547_v22  ;;  %v682_v2 = vmul.f32 %v1784_v19, %v632_v24  ;;  %v549_v21 = vpop.f32.mrb[25].mxu0  ;;  %v634_v8 = vpop.f32.mrb[25].mxu1 }
 0x17f   : > { %v847_v38 = vmax.f32 %v807_v32, %v1893_v63  ;;  %v735_v39 = vmax.f32 %v703_v18, 0.0  ;;  %v752_v40 = vmax.f32 %v720_v26, 0.0  ;;  %v840_v41 = vsel %vm804_vm1, 0.0, %v824_v16 }
 0x180   : > { %v704_v44 = vadd.f32 %v1790_v25, %v665_v33  ;;  %v721_v45 = vadd.f32 %v1790_v25, %v682_v2  ;;  %v1911_v50 = vmax.f32 %v773_v10, %v846_v11 }
 0x181   : > { %v855_v51 = vmax.f32 %v774_v29, %v847_v38  ;;  %v759_v52 = vmax.f32 %v727_v6, %v735_v39  ;;  %v791_v53 = vrot.slane %v735_v39, 7  ;;  %v1915_v56 = vmax.f32 %v744_v31, %v752_v40  ;;  %v552_v27 = vpop.f32.mrb[26].mxu0  ;;  %v637_v57 = vpop.f32.mrb[26].mxu1 }
 0x182   : > { %v825_v58 = vrot.slane %v752_v40, 7  ;;  %v736_v59 = vmax.f32 %v704_v44, 0.0  ;;  %v753_v61 = vmax.f32 %v721_v45, 0.0  ;;  %v666_v1 = vmul.f32 %v1784_v19, %v552_v27  ;;  %v554_v3 = vpop.f32.mrb[27].mxu0  ;;  %v639_v4 = vpop.f32.mrb[27].mxu1 }
 0x183   : > { %v863_v5 = vmax.f32 %v855_v51, %v1861_v28  ;;  %v775_v10 = vmax.f32 %v759_v52, %v1896_v14  ;;  %v808_v60 = vsel %vm804_vm1, 0.0, %v791_v53  ;;  %v683_v48 = vmul.f32 %v1784_v19, %v637_v57 }
 0x184   : > { %v848_v6 = vmax.f32 %v808_v60, %v840_v41  ;;  %v841_v31 = vsel %vm804_vm1, 0.0, %v825_v58  ;;  %v760_v11 = vmax.f32 %v728_v30, %v736_v59  ;;  %v792_v13 = vrot.slane %v736_v59, 7 }
 0x185   : > { %v1926_v0 = vmax.f32 %v863_v5, %v1880_v49  ;;  %v1930_v16 = vmax.f32 %v745_v35, %v753_v61  ;;  %v826_v28 = vrot.slane %v753_v61, 7  ;;  %v705_v18 = vadd.f32 %v1790_v25, %v666_v1  ;;  %v557_v26 = vpop.f32.mrb[28].mxu0  ;;  %v642_v22 = vpop.f32.mrb[28].mxu1 }
 0x186   : > { %v856_v24 = vmax.f32 %v775_v10, %v848_v6  ;;  %v776_v29 = vmax.f32 %v760_v11, %v1915_v56  ;;  %v809_v32 = vsel %vm804_vm1, 0.0, %v792_v13  ;;  %v722_v7 = vadd.f32 %v1790_v25, %v683_v48  ;;  %v559_v30 = vpop.f32.mrb[29].mxu0  ;;  %v644_v33 = vpop.f32.mrb[29].mxu1 }
 0x187   : > { %v698_v49 = vadd.f32 %v1790_v25, %v659_v9  ;;  %v849_v35 = vmax.f32 %v809_v32, %v841_v31  ;;  %v737_v2 = vmax.f32 %v705_v18, 0.0  ;;  %v842_v8 = vsel %vm804_vm1, 0.0, %v826_v28 }
 0x188   : > { %v864_v21 = vmax.f32 %v856_v24, %v1884_v54  ;;  %v754_v38 = vmax.f32 %v722_v7, 0.0  ;;  %v667_v39 = vmul.f32 %v1784_v19, %v557_v26  ;;  %v684_v51 = vmul.f32 %v1784_v19, %v642_v22 }
 0x189   : > { %v857_v40 = vmax.f32 %v776_v29, %v849_v35  ;;  %v761_v44 = vmax.f32 %v729_v46, %v737_v2  ;;  %v793_v45 = vrot.slane %v737_v2, 7  ;;  %v562_v9 = vpop.f32.mrb[30].mxu0  ;;  %v715_v57 = vadd.f32 %v1790_v25, %v676_v34 }
 0x18a   : > { %v876_v52 = vmax.f32 %v864_v21, %v1893_v63  ;;  %v770_v37 = vmax.f32 %v746_v15, %v754_v38  ;;  %v827_v53 = vrot.slane %v754_v38, 7  ;;  %v706_v54 = vadd.f32 %v1790_v25, %v667_v39  ;;  %v564_v27 = vpop.f32.mrb[31].mxu0 }
 0x18b   : > { %v865_v58 = vmax.f32 %v857_v40, %v1896_v14  ;;  %v777_v17 = vmax.f32 %v761_v44, %v1930_v16  ;;  %v810_v46 = vsel %vm804_vm1, 0.0, %v793_v45  ;;  %v730_v59 = vmax.f32 %v698_v49, 0.0  ;;  %v1117_v45 = vld [vmem:[%s2047_s4] ss:$0 sm:$0xff] }
 0x18c   : > { %v850_v61 = vmax.f32 %v810_v46, %v842_v8  ;;  %v738_v1 = vmax.f32 %v706_v54, 0.0  ;;  %v699_v63 = vadd.f32 %v1790_v25, %v660_v12  ;;  %v723_v42 = vadd.f32 %v1790_v25, %v684_v51 }
 0x18d   : > { %v877_v3 = vmax.f32 %v865_v58, %v840_v41  ;;  %v668_v15 = vmul.f32 %v1784_v19, %v562_v9  ;;  %v567_v4 = vpop.f32.mrb[32].mxu0  ;;  %v843_v34 = vsel %vm804_vm1, 0.0, %v827_v53  ;;  %v747_v48 = vmax.f32 %v715_v57, 0.0 }
 0x18e   : > { %v858_v5 = vmax.f32 %v777_v17, %v850_v61  ;;  %v762_v10 = vmax.f32 %v730_v59, %v738_v1  ;;  %v794_v14 = vrot.slane %v738_v1, 7  ;;  %v569_v60 = vpop.f32.mrb[33].mxu0  ;;  %v755_v6 = vmax.f32 %v723_v42, 0.0 }
 0x18f   : > { %v707_v11 = vadd.f32 %v1790_v25, %v668_v15  ;;  %v669_v13 = vmul.f32 %v1784_v19, %v567_v4  ;;  %v731_v29 = vmax.f32 %v699_v63, 0.0  ;;  %v891_v53 = vmul.f32 %v1117_v45, %v876_v52 }
 0x190   : > { %v866_v28 = vmax.f32 %v858_v5, %v1915_v56  ;;  %v778_v41 = vmax.f32 %v762_v10, %v770_v37  ;;  %v811_v18 = vsel %vm804_vm1, 0.0, %v794_v14  ;;  %v771_v22 = vmax.f32 %v747_v48, %v755_v6 }
 0x191   : > { %v851_v26 = vmax.f32 %v811_v18, %v843_v34  ;;  %v828_v24 = vrot.slane %v755_v6, 7  ;;  %v739_v7 = vmax.f32 %v707_v11, 0.0  ;;  %v708_v30 = vadd.f32 %v1790_v25, %v669_v13 }
 0x192   : > { %v878_v32 = vmax.f32 %v866_v28, %v841_v31  ;;  %v870_v31 = vrot.slane %v1399_v62, 7  ;;  %v890_v62 = vmul.f32 %v1117_v45, %v1926_v0  ;;  %v892_v36 = vmul.f32 %v1117_v45, %v877_v3 }
 0x193   : > { %v859_v33 = vmax.f32 %v778_v41, %v851_v26  ;;  %v844_v49 = vsel %vm804_vm1, 0.0, %v828_v24  ;;  %v763_v12 = vmax.f32 %v731_v29, %v739_v7  ;;  %v795_v35 = vrot.slane %v739_v7, 7 }
 0x194   : > { %v740_v2 = vmax.f32 %v708_v30, 0.0 }
 0x195   : > { %v867_v19 = vmax.f32 %v859_v33, %v1930_v16  ;;  %v779_v56 = vmax.f32 %v763_v12, %v771_v22  ;;  %v812_v21 = vsel %vm804_vm1, 0.0, %v795_v35 }
 0x196   : > { %v764_v38 = vmax.f32 %v740_v2, %v748_v55  ;;  %v852_v40 = vmax.f32 %v812_v21, %v844_v49 }
 0x197   : > { %v879_v39 = vmax.f32 %v867_v19, %v842_v8  ;;  %v872_v8 = vsel %vm804_vm1, 0.0, %v870_v31 }
 0x198   : > { %v772_v25 = vmax.f32 %v1859_v23, %v764_v38  ;;  %v862_v44 = vmax.f32 %v1911_v50, %v764_v38  ;;  %v860_v51 = vmax.f32 %v779_v56, %v852_v40  ;;  %v1118_v50 = vld [vmem:[%s2048_s5] ss:$0 sm:$0xff] }
 0x199   : > { %v905_v58 = vadd.f32 %v1118_v50, %v890_v62  ;;  %v906_v17 = vadd.f32 %v1118_v50, %v891_v53  ;;  %v907_v61 = vadd.f32 %v1118_v50, %v892_v36  ;;  %v894_v0 = vmul.f32 %v1117_v45, %v879_v39  ;;  %v951_v56 = vld [vmem:[%s2050_s7] sm:$0x1] }
 0x19a   : > { %v853_v16 = vmax.f32 %v772_v25, %v845_v43  ;;  %v874_v47 = vmax.f32 %v862_v44, %v1856_v20  ;;  %v868_v55 = vmax.f32 %v860_v51, %v770_v37  ;;  %v893_v20 = vmul.f32 %v1117_v45, %v878_v32 }
 0x19b   : > { %v913_v59 = vmax.f32 %v905_v58, 0.0  ;;  %v914_v63 = vmax.f32 %v906_v17, 0.0  ;;  %v909_v3 = vadd.f32 %v1118_v50, %v894_v0 }
 0x19c   : > { %v889_v9 = vmul.f32 %v1117_v45, %v874_v47  ;;  %v861_v23 = vmax.f32 %v853_v16, 0.0  ;;  %v880_v54 = vmax.f32 %v868_v55, %v843_v34  ;;  %v908_v42 = vadd.f32 %v1118_v50, %v893_v20 }
 0x19d   : > { %v915_v34 = vmax.f32 %v907_v61, 0.0  ;;  %v923_v10 = vsel %vm919_vm2, %v913_v59, 0.0  ;;  %v925_v60 = vsel %vm919_vm2, %v914_v63, 0.0  ;;  %v917_v28 = vmax.f32 %v909_v3, 0.0 }
 0x19e   : > { %v904_v27 = vadd.f32 %v1118_v50, %v889_v9  ;;  %v873_v57 = vmax.f32 %v861_v23, %v872_v8  ;;  %v895_v15 = vmul.f32 %v1117_v45, %v880_v54  ;;  %v916_v48 = vmax.f32 %v908_v42, 0.0 }
 0x19f   : > { %v927_v13 = vsel %vm919_vm2, %v915_v34, 0.0  ;;  %v931_v24 = vsel %vm919_vm2, %v917_v28, 0.0 }
 0x1a0   : > { %v888_v43 = vmul.f32 %v1117_v45, %v873_v57  ;;  %v912_v37 = vmax.f32 %v904_v27, 0.0  ;;  %v910_v6 = vadd.f32 %v1118_v50, %v895_v15  ;;  %v929_v18 = vsel %vm919_vm2, %v916_v48, 0.0 }
 0x1a2   : > { %v903_v46 = vadd.f32 %v1118_v50, %v888_v43  ;;  %v921_v52 = vsel %vm919_vm2, %v912_v37, 0.0  ;;  %v918_v26 = vmax.f32 %v910_v6, 0.0 }
 0x1a4   : > { %v911_v1 = vmax.f32 %v903_v46, 0.0  ;;  %v933_v32 = vsel %vm919_vm2, %v918_v26, 0.0 }
 0x1a6   : > { %v920_v4 = vsel %vm919_vm2, %v911_v1, 0.0 }
 0x1a7   : > { %v922_v5 = vadd.f32 %v921_v52, %v920_v4 }
 0x1a9   : > { %v924_v14 = vadd.f32 %v923_v10, %v922_v5 }
 0x1ab   : > { %v926_v11 = vadd.f32 %v925_v60, %v924_v14 }
 0x1ad   : > { %v928_v41 = vadd.f32 %v927_v13, %v926_v11 }
 0x1af   : > { %v930_v22 = vadd.f32 %v929_v18, %v928_v41 }
 0x1b1   : > { %v932_v29 = vadd.f32 %v931_v24, %v930_v22 }
 0x1b3   : > { %v934_v7 = vadd.f32 %v933_v32, %v932_v29 }
 0x1b5   : > { %v935_v30 = vrot.slane %v934_v7, 4 }
 0x1b7   : > { %v936_v33 = vadd.f32 %v935_v30, %v934_v7 }
 0x1b9   : > { %v937_v49 = vrot.slane %v936_v33, 2 }
 0x1bb   : > { %v938_v12 = vadd.f32 %v937_v49, %v936_v33 }
 0x1bd   : > { %v939_v35 = vrot.slane %v938_v12, 1 }
 0x1bf   : > { %v940_v2 = vadd.f32 %v939_v35, %v938_v12 }
 0x1c1   : > { %v942_v19 = vmul.f32 0.015625, %v940_v2 }
 0x1c3   : > { %1151 = vmatmul.mubr.msk.f32.vlgmr.msra.gmra.mrb[30].mxu1 %vm919_vm2, %v942_v19 }
 0x296   : > { %v1021_v21 = vpop.f32.mrb[30].mxu1 }
 0x297   : > { %v1022_v38 = vadd.f32 %v1021_v21, %v951_v56  ;;  %v1152_v39 = vpop.f32.mrb[31].mxu1 }
 0x299   : > { %1026 = vst.msk [vmem:[%s323_s26] sm:$0x1] %vm1025_vm3, %v1022_v38 }
 0x29a   : > { %1339 = shalt.err (!%p1336_p2)
}
 0x29b   : > { %s1340_s22 = scalar_lea.hbm %s1999_s15, 16  ;;  %s1344_s24 = scalar_lea.hbm %s2051_s8, 32 }
 0x29c   : > { %p1341_p4 = scmp.ne.s32.totalorder %s1999_s15, %s1340_s22  ;;  %p1345_p9 = scmp.lt.u32.totalorder %s1999_s15, %s2051_s8 }
 0x29d   : > { %p1346_p1 = scmp.lt.u32.totalorder %s1344_s24, %s1340_s22  ;;  %p1348_p6 = scmp.lt.u32.totalorder %s1340_s22, %s1999_s15 }
 0x29e   : > { %p1342_p5 = pnand %p1341_p4, %p2058_p11 }
 0x29f   : > { %p1347_p3 = por %p1346_p1, %p1345_p9 }
 0x2a0   : > { %p1343_p7 = pneg %p1342_p5 }
 0x2a1   : > { %p1349_p12 = por %p1348_p6, %p1347_p3 }
 0x2a3   : > { %p1350_p13 = pnand %p1349_p12, %p1343_p7 }
 0x2a5   : > { %1353 = shalt.err (!%p1350_p13)
}
 0x2a6   : > { %1247 = dma.vmem_to_hbm [thread:$0]  (%p2058_p11), %s2001_s10, 16, %s1999_s15, %s1028_s25  }
 0x2a7 PF: > { %s1052_s20 = sand.u32 1, %s1380_s27   ;;  %p2059_p8 = scmp.ne.s32.totalorder %s2056_s18, 0 }
 0x2a8   : > { %p2060_p10 = scmp.ge.s32.totalorder %s1392_s30, 2  ;;  %s1053_s16 = scalar_lea.sflag [#allocation4], %s1052_s20 }
 0x2aa   : > { %p1254_p0 = pnand %p2060_p10, %p2059_p8 }
 0x2ac   : > { %1375 = dma.done.wait (!%p1254_p0), %s1053_s16, 16  }
 0x2ad   : > { %1377 = vsyncadd (!%p1254_p0), %s1053_s16, 4294967280  ;;  %p21_p2 = scmp.ge.s32.totalorder %s1471_s11, 4   ;;  %s2061_s27 = smov %s1384_s28 }
 0x2ae   : > { %s2062_s28 = smov %s1388_s29  ;;  %s2063_s29 = smov %s1483_s14 }
 0x2af   : > { %s2064_s30 = smov %s1471_s11  ;;  %23 = sbr.rel (!%p21_p2) target bundleno = 5 (0x5), region = 97 }
 0x2b6   :  { %1057 = vsyncpa [#allocation3], 1 }
 0x2b7   :  { %1059 = vsyncpa [#allocation3 + $0x1], 1 }
 0x2b8   :  { %1060 = vsyncpa [#allocation4], 1 }
 0x2b9   :  { %1062 = vsyncpa [#allocation4 + $0x1], 1 }

</bundles_post_ra>
